<compile_context>
chip_gen: v5e
topology: v5e:2x2
jax: 0.10.0
libtpu: 0.0.40
codegen_flags: <defaults>
</compile_context>

<pallas_src>
import jax
import jax.numpy as jnp
from jax.experimental import pallas as pl
from jax.experimental.pallas import tpu as pltpu


def _round_up(v, m):
    return (v + m - 1) // m * m


def _cos_scores(supp_f, feat, y1hot, scale, bias, logits_ref):
    """Epilogue: prototypes -> L2 normalize -> scaled cosine scores (all f32)."""
    # prototypes, already averaged (1/count folded into y1hot in the wrapper)
    protos = jnp.dot(y1hot, supp_f, preferred_element_type=jnp.float32)   # (K_p, D_p)
    # F.normalize semantics: x / max(||x||_2, eps) == x * rsqrt(max(sumsq, eps^2))
    eps2 = jnp.float32(1e-24)                                             # (1e-12)^2
    p_inv = jax.lax.rsqrt(
        jnp.maximum(jnp.sum(protos * protos, axis=-1, keepdims=True), eps2))
    protos_n = protos * p_inv                                             # (K_p, D_p)
    f_inv = jax.lax.rsqrt(
        jnp.maximum(jnp.sum(feat * feat, axis=-1, keepdims=True), eps2))  # (nQ, 1)
    # cosine numerators: feat @ protos_n^T (contract feature dim of both)
    raw = jax.lax.dot_general(feat, protos_n, (((1,), (1,)), ((), ())),
                              preferred_element_type=jnp.float32)         # (nQ, K_p)
    logits_ref[...] = (scale * (raw * f_inv + bias)).astype(logits_ref.dtype)


def _protonet_single_kernel(y1hot_ref, supp_ref, x_ref, w_ref,
                            scale_ref, bias_ref, logits_ref):
    """Whole reduction dim in one tile: no scratch, no init/finalize overhead."""
    w = w_ref[...]
    supp_f = jnp.dot(supp_ref[...], w, preferred_element_type=jnp.float32)
    feat = jnp.dot(x_ref[...], w, preferred_element_type=jnp.float32)
    _cos_scores(supp_f, feat, y1hot_ref[...], scale_ref[0], bias_ref[0], logits_ref)


def _protonet_tiled_kernel(y1hot_ref, supp_ref, x_ref, w_ref,
                           scale_ref, bias_ref, logits_ref, supp_acc, feat_acc):
    """feat_in tiled over grid axis 0; separate f32 accumulators for supp / query."""
    k = pl.program_id(0)

    @pl.when(k == 0)
    def _():
        supp_acc[...] = jnp.zeros_like(supp_acc)
        feat_acc[...] = jnp.zeros_like(feat_acc)

    w = w_ref[...]
    supp_acc[...] += jnp.dot(supp_ref[...], w, preferred_element_type=jnp.float32)
    feat_acc[...] += jnp.dot(x_ref[...], w, preferred_element_type=jnp.float32)

    @pl.when(k == pl.num_programs(0) - 1)
    def _():
        _cos_scores(supp_acc[...], feat_acc[...], y1hot_ref[...],
                    scale_ref[0], bias_ref[0], logits_ref)


def protonet_merge_forward(supp_x, supp_y, x, w_backbone, scale_cls, bias,
                           num_classes, *, act_dtype=jnp.bfloat16, tk=None,
                           vmem_budget_bytes=40 * 1024 * 1024):
    """supp_x: (nSupp, C, H, W), supp_y: (nSupp,) int32, x: (nQuery, C, H, W).

    num_classes is a static Python int (n-way of the episode). act_dtype is the MXU
    operand dtype (bf16 by default; f32 reproduces the f32 reference to 1e-4).
    """
    nSupp = supp_x.shape[0]
    nQuery = x.shape[0]
    feat_in = supp_x.shape[1] * supp_x.shape[2] * supp_x.shape[3]
    D = w_backbone.shape[1]

    K_p = _round_up(num_classes, 128)     # lane-dense output / prototype rows
    D_p = _round_up(D, 128)

    f32 = jnp.float32
    act_bytes = jnp.dtype(act_dtype).itemsize

    # ---- reduction-tile size from a VMEM budget (v7x-safe; collapses to 1 step) ----
    per_tk = 2 * (nSupp + nQuery + D_p) * act_bytes          # double-buffered streams
    fixed = 4 * ((nSupp + nQuery) * D_p + 2 * nQuery * K_p + 2 * K_p * nSupp)
    if tk is None:
        avail = max(vmem_budget_bytes - fixed, 128 * per_tk)
        tk = max(128, (avail // per_tk) // 128 * 128)

    single_step = tk >= feat_in
    if single_step:
        tk_use = feat_in            # block spans full reduction dim -> no padding
        feat_in_p = feat_in
        n_k = 1
    else:
        tk_use = max(128, (min(tk, _round_up(feat_in, 128)) // 128) * 128)
        feat_in_p = _round_up(feat_in, tk_use)
        n_k = feat_in_p // tk_use

    # ---- operands: flatten + dtype cast only; pad only if shapes demand it ----
    supp_flat = supp_x.reshape(nSupp, feat_in).astype(act_dtype)
    x_flat = x.reshape(nQuery, feat_in).astype(act_dtype)
    w = w_backbone.astype(act_dtype)
    if feat_in_p != feat_in:
        supp_flat = jnp.pad(supp_flat, ((0, 0), (0, feat_in_p - feat_in)))
        x_flat = jnp.pad(x_flat, ((0, 0), (0, feat_in_p - feat_in)))
        w = jnp.pad(w, ((0, feat_in_p - feat_in), (0, 0)))
    if D_p != D:
        w = jnp.pad(w, ((0, 0), (0, D_p - D)))

    # one_hot(supp_y)^T with the per-class count division folded in (K built at K_p).
    one_hot = jax.nn.one_hot(supp_y, K_p, dtype=f32)                  # (nSupp, K_p)
    counts = jnp.maximum(jnp.sum(one_hot, axis=0), 1.0)               # guard empty classes
    y1hot = (one_hot / counts[None, :]).T                             # (K_p, nSupp)

    smem = pl.BlockSpec(memory_space=pltpu.MemorySpace.SMEM)
    in_specs = [
        pl.BlockSpec((K_p, nSupp), lambda k: (0, 0)),      # one-hot (tiny, resident)
        pl.BlockSpec((nSupp, tk_use), lambda k: (0, k)),   # support activations
        pl.BlockSpec((nQuery, tk_use), lambda k: (0, k)),  # query activations
        pl.BlockSpec((tk_use, D_p), lambda k: (k, 0)),     # backbone projection W
        smem,                                              # scale_cls
        smem,                                              # bias
    ]
    out_spec = pl.BlockSpec((nQuery, K_p), lambda k: (0, 0))

    vmem_need = per_tk * tk_use + fixed + (4 << 20)
    compiler_params = pltpu.CompilerParams(
        dimension_semantics=("arbitrary",),
        vmem_limit_bytes=int(min(max(vmem_need, 32 << 20), 48 << 20)),
    )

    if single_step:
        kernel = _protonet_single_kernel
        scratch_shapes = []
    else:
        kernel = _protonet_tiled_kernel
        scratch_shapes = [pltpu.VMEM((nSupp, D_p), f32),
                          pltpu.VMEM((nQuery, D_p), f32)]

    logits_p = pl.pallas_call(
        kernel,
        out_shape=jax.ShapeDtypeStruct((nQuery, K_p), f32),
        grid=(n_k,),
        in_specs=in_specs,
        out_specs=out_spec,
        scratch_shapes=scratch_shapes,
        compiler_params=compiler_params,
    )(y1hot, supp_flat, x_flat, w, scale_cls.astype(f32), bias.astype(f32))

    return logits_p[:, :num_classes]


def _reference(supp_x, supp_y, x, w_backbone, scale_cls, bias, num_classes,
               act_dtype=jnp.float32):
    nSupp = supp_x.shape[0]
    nQuery = x.shape[0]
    feat_in = supp_x.shape[1] * supp_x.shape[2] * supp_x.shape[3]
    a_s = supp_x.reshape(nSupp, feat_in).astype(act_dtype)
    a_q = x.reshape(nQuery, feat_in).astype(act_dtype)
    w = w_backbone.astype(act_dtype)
    supp_f = jnp.dot(a_s, w, preferred_element_type=jnp.float32)
    feat = jnp.dot(a_q, w, preferred_element_type=jnp.float32)
    y1hot = jax.nn.one_hot(supp_y, num_classes, dtype=jnp.float32).T
    protos = (y1hot @ supp_f) / jnp.sum(y1hot, axis=-1, keepdims=True)
    f_n = feat / jnp.maximum(jnp.linalg.norm(feat, axis=-1, keepdims=True), 1e-12)
    w_n = protos / jnp.maximum(jnp.linalg.norm(protos, axis=-1, keepdims=True), 1e-12)
    return scale_cls[0] * (f_n @ w_n.T + bias[0])


if __name__ == "__main__":
    key = jax.random.PRNGKey(0)
    k1, k2, k3 = jax.random.split(key, 3)

    # 5-way 5-shot episode, small images, small feature dim
    num_classes, n_shot, n_query_per = 5, 5, 3
    C, H, W_ = 4, 16, 16
    D = 128
    nSupp = num_classes * n_shot           # 25
    nQuery = num_classes * n_query_per     # 15
    feat_in = C * H * W_                   # 1024

    supp_x = jax.random.normal(k1, (nSupp, C, H, W_), dtype=jnp.float32)
    x = jax.random.normal(k2, (nQuery, C, H, W_), dtype=jnp.float32)
    supp_y = jnp.tile(jnp.arange(num_classes, dtype=jnp.int32), n_shot)

    # deterministic parameters (module __init__: bias=0, scale_cls=10; synthetic backbone W)
    w_backbone = jax.random.normal(k3, (feat_in, D), dtype=jnp.float32) * 0.02
    scale_cls = jnp.full((1,), 10.0, dtype=jnp.float32)
    bias = jnp.zeros((1,), dtype=jnp.float32)

    # 1) default path: bf16 MXU operands, auto tk (single-step kernel, no scratch)
    logits = protonet_merge_forward(supp_x, supp_y, x, w_backbone,
                                    scale_cls, bias, num_classes)
    logits = jax.block_until_ready(logits)
    ref_bf16 = _reference(supp_x, supp_y, x, w_backbone, scale_cls, bias,
                          num_classes, act_dtype=jnp.bfloat16)
    assert logits.shape == (nQuery, num_classes)
    assert jnp.allclose(logits, ref_bf16, atol=2e-3, rtol=2e-3), "bf16 mismatch"

    # 2) f32 operand path matches the f32 reference tightly (semantics check)
    logits_f32 = protonet_merge_forward(supp_x, supp_y, x, w_backbone,
                                        scale_cls, bias, num_classes,
                                        act_dtype=jnp.float32)
    logits_f32 = jax.block_until_ready(logits_f32)
    ref_f32 = _reference(supp_x, supp_y, x, w_backbone, scale_cls, bias, num_classes)
    assert jnp.allclose(logits_f32, ref_f32, atol=1e-4, rtol=1e-4), "f32 mismatch"

    # 3) forced small tk exercises the multi-step (tiled reduction) kernel
    logits_tiled = protonet_merge_forward(supp_x, supp_y, x, w_backbone,
                                          scale_cls, bias, num_classes, tk=256)
    logits_tiled = jax.block_until_ready(logits_tiled)
    assert jnp.allclose(logits_tiled, ref_bf16, atol=2e-3, rtol=2e-3), "tiled mismatch"

    print("KERNEL_OK")
</pallas_src>

<mosaic_0001>
module attributes {stable_mosaic.version = 11 : i64} {
  func.func @_protonet_single_kernel(%arg0: i32, %arg1: memref<128x25xf32, #tpu.memory_space<vmem>>, %arg2: memref<25x1024xbf16, #tpu.memory_space<vmem>>, %arg3: memref<15x1024xbf16, #tpu.memory_space<vmem>>, %arg4: memref<1024x128xbf16, #tpu.memory_space<vmem>>, %arg5: memref<1xf32, #tpu.memory_space<smem>>, %arg6: memref<1xf32, #tpu.memory_space<smem>>, %arg7: memref<15x128xf32, #tpu.memory_space<vmem>>) attributes {dimension_semantics = [#tpu.dimension_semantics<arbitrary>], iteration_bounds = array<i64: 1>, scalar_prefetch = 0 : i64, scratch_operands = 0 : i64, tpu.core_type = #tpu.core_type<tc>, window_params = [{pipeline_mode = #tpu.pipeline_mode<synchronous>, transform_indices = @transform_0, window_bounds = array<i64: 128, 25>}, {transform_indices = @transform_1, window_bounds = array<i64: 25, 1024>}, {transform_indices = @transform_2, window_bounds = array<i64: 15, 1024>}, {transform_indices = @transform_3, window_bounds = array<i64: 1024, 128>}, {transform_indices = @transform_4, window_bounds = array<i64: 1>}, {transform_indices = @transform_5, window_bounds = array<i64: 1>}, {pipeline_mode = #tpu.pipeline_mode<synchronous>, transform_indices = @transform_6, window_bounds = array<i64: 15, 128>}]} {
    %c0 = arith.constant 0 : index
    %c0_0 = arith.constant 0 : index
    %0 = vector.load %arg4[%c0, %c0_0] : memref<1024x128xbf16, #tpu.memory_space<vmem>>, vector<1024x128xbf16>
    %c0_1 = arith.constant 0 : index
    %c0_2 = arith.constant 0 : index
    %1 = vector.load %arg2[%c0_1, %c0_2] : memref<25x1024xbf16, #tpu.memory_space<vmem>>, vector<25x1024xbf16>
    %cst = arith.constant dense<0.000000e+00> : vector<25x128xf32>
    %2 = tpu.matmul %1, %0, %cst {dimension_numbers = #tpu.dot_dimension_numbers<[1], [0], [0], [1], [0, 0, 1, 1], [], []>} : vector<25x1024xbf16>, vector<1024x128xbf16>, vector<25x128xf32> -> vector<25x128xf32>
    %c0_3 = arith.constant 0 : index
    %c0_4 = arith.constant 0 : index
    %3 = vector.load %arg3[%c0_3, %c0_4] : memref<15x1024xbf16, #tpu.memory_space<vmem>>, vector<15x1024xbf16>
    %cst_5 = arith.constant dense<0.000000e+00> : vector<15x128xf32>
    %4 = tpu.matmul %3, %0, %cst_5 {dimension_numbers = #tpu.dot_dimension_numbers<[1], [0], [0], [1], [0, 0, 1, 1], [], []>} : vector<15x1024xbf16>, vector<1024x128xbf16>, vector<15x128xf32> -> vector<15x128xf32>
    %c0_6 = arith.constant 0 : index
    %c0_7 = arith.constant 0 : index
    %5 = vector.load %arg1[%c0_6, %c0_7] : memref<128x25xf32, #tpu.memory_space<vmem>>, vector<128x25xf32>
    %c0_8 = arith.constant 0 : index
    %6 = memref.load %arg5[%c0_8] : memref<1xf32, #tpu.memory_space<smem>>
    %c0_9 = arith.constant 0 : index
    %7 = memref.load %arg6[%c0_9] : memref<1xf32, #tpu.memory_space<smem>>
    %cst_10 = arith.constant dense<0.000000e+00> : vector<128x128xf32>
    %8 = tpu.matmul %5, %2, %cst_10 {dimension_numbers = #tpu.dot_dimension_numbers<[1], [0], [0], [1], [0, 0, 1, 1], [], []>} : vector<128x25xf32>, vector<25x128xf32>, vector<128x128xf32> -> vector<128x128xf32>
    %9 = arith.mulf %8, %8 : vector<128x128xf32>
    %cst_11 = arith.constant dense<0.000000e+00> : vector<128xf32>
    %10 = vector.multi_reduction <add>, %9, %cst_11 [1] : vector<128x128xf32> to vector<128xf32>
    %11 = vector.shape_cast %10 : vector<128xf32> to vector<128x1xf32>
    %cst_12 = arith.constant 1.000000e-24 : f32
    %12 = vector.broadcast %cst_12 : f32 to vector<128x1xf32>
    %13 = arith.maximumf %11, %12 : vector<128x1xf32>
    %14 = math.rsqrt %13 : vector<128x1xf32>
    %15 = vector.broadcast %14 : vector<128x1xf32> to vector<128x128xf32>
    %16 = arith.mulf %8, %15 : vector<128x128xf32>
    %17 = arith.mulf %4, %4 : vector<15x128xf32>
    %cst_13 = arith.constant dense<0.000000e+00> : vector<15xf32>
    %18 = vector.multi_reduction <add>, %17, %cst_13 [1] : vector<15x128xf32> to vector<15xf32>
    %19 = vector.shape_cast %18 : vector<15xf32> to vector<15x1xf32>
    %cst_14 = arith.constant 1.000000e-24 : f32
    %20 = vector.broadcast %cst_14 : f32 to vector<15x1xf32>
    %21 = arith.maximumf %19, %20 : vector<15x1xf32>
    %22 = math.rsqrt %21 : vector<15x1xf32>
    %cst_15 = arith.constant dense<0.000000e+00> : vector<15x128xf32>
    %23 = tpu.matmul %4, %16, %cst_15 {dimension_numbers = #tpu.dot_dimension_numbers<[1], [1], [0], [0], [0, 0, 1, 0], [], []>} : vector<15x128xf32>, vector<128x128xf32>, vector<15x128xf32> -> vector<15x128xf32>
    %24 = vector.broadcast %22 : vector<15x1xf32> to vector<15x128xf32>
    %25 = arith.mulf %23, %24 : vector<15x128xf32>
    %26 = vector.broadcast %7 : f32 to vector<15x128xf32>
    %27 = arith.addf %25, %26 : vector<15x128xf32>
    %28 = vector.broadcast %6 : f32 to vector<15x128xf32>
    %29 = arith.mulf %28, %27 : vector<15x128xf32>
    %c0_16 = arith.constant 0 : index
    %c0_17 = arith.constant 0 : index
    %30 = vector.load %arg7[%c0_16, %c0_17] : memref<15x128xf32, #tpu.memory_space<vmem>>, vector<15x128xf32>
    tpu.vector_store %arg7[%c0_16, %c0_17], %29 {strides = array<i32>} : memref<15x128xf32, #tpu.memory_space<vmem>>, vector<15x128xf32>,
    return
  }
  func.func @transform_0(%arg0: i32) -> (i32, i32) {
    %c0_i32 = arith.constant 0 : i32
    %c0_i32_0 = arith.constant 0 : i32
    %c0_i32_1 = arith.constant 0 : i32
    return %c0_i32, %c0_i32_0 : i32, i32
  }
  func.func @transform_1(%arg0: i32) -> (i32, i32) {
    %c0_i32 = arith.constant 0 : i32
    %c0_i32_0 = arith.constant 0 : i32
    return %c0_i32, %arg0 : i32, i32
  }
  func.func @transform_2(%arg0: i32) -> (i32, i32) {
    %c0_i32 = arith.constant 0 : i32
    %c0_i32_0 = arith.constant 0 : i32
    return %c0_i32, %arg0 : i32, i32
  }
  func.func @transform_3(%arg0: i32) -> (i32, i32) {
    %c0_i32 = arith.constant 0 : i32
    %c0_i32_0 = arith.constant 0 : i32
    return %arg0, %c0_i32 : i32, i32
  }
  func.func @transform_4(%arg0: i32) -> i32 {
    %c0_i32 = arith.constant 0 : i32
    %c0_i32_0 = arith.constant 0 : i32
    return %c0_i32 : i32
  }
  func.func @transform_5(%arg0: i32) -> i32 {
    %c0_i32 = arith.constant 0 : i32
    %c0_i32_0 = arith.constant 0 : i32
    return %c0_i32 : i32
  }
  func.func @transform_6(%arg0: i32) -> (i32, i32) {
    %c0_i32 = arith.constant 0 : i32
    %c0_i32_0 = arith.constant 0 : i32
    %c0_i32_1 = arith.constant 0 : i32
    return %c0_i32, %c0_i32_0 : i32, i32
  }
}

</mosaic_0001>

<bundles_post_ra>
// kernel: tpu_custom_call.1
= control target key start
LH: loop header
LB: loop body
LE: loop exit
PB: predicated region body
PF: predicated region fallthrough
CT: control target
= control target key end

     0   :  { %13 = vsyncpa [#allocation5], 0  ;;  %s2785_s0 = inlined_call_operand.vmem [shape: f32[128,25], index: 0, kind: input, shape index: {}]   ;;  %s2786_s1 = inlined_call_operand.vmem [shape: bf16[25,1024], index: 1, kind: input, shape index: {}]   ;;  %s2787_s2 = inlined_call_operand.hbm [shape: bf16[15,1024], index: 2, kind: input, shape index: {}]   ;;  %s2788_s3 = inlined_call_operand.hbm [shape: bf16[1024,128], index: 3, kind: input, shape index: {}]   ;;  %s2789_s4 = inlined_call_operand.<no memory space> [shape: f32[1], index: 4, kind: input, shape index: {}]   ;;  %s2790_s5 = inlined_call_operand.<no memory space> [shape: f32[1], index: 5, kind: input, shape index: {}]   ;;  %s2791_s6 = inlined_call_operand.hbm [shape: f32[15,128], index: 6, kind: output, shape index: {}]  }
   0x1   :  { %14 = vsyncpa [#allocation8], 0 }
   0x2   :  { %15 = vsyncpa [#allocation6], 0  ;;  %s24_s23 = sshll.u32 %s2787_s2, 4  ;;  %s2021_s24 = smov [#allocation4]   ;;  %s25_s23 = int_to_ptr.hbm [resolvable:$true] %s24_s23 }
   0x3   :  { %s26_s25 = sshll.u32 %s2021_s24, 4  ;;  %s37_s28 = sshll.u32 %s2788_s3, 4  ;;  %s27_s25 = int_to_ptr.vmem [resolvable:$true] %s26_s25  ;;  %s38_s28 = int_to_ptr.hbm [resolvable:$true] %s37_s28 }
   0x4   :  { %s2022_s29 = smov 512   ;;  %s2023_s30 = smov 32  }
   0x5   :  { %32 = dma.hbm_to_vmem [thread:$0]  %s25_s23, 1024, %s27_s25, [#allocation5], %s2022_s29, %s2022_s29, %s2023_s30  }
   0x6   :  { %s2024_s7 = smov [#allocation7]   ;;  %s2025_s9 = smov 64  }
   0x7   :  { %s39_s8 = sshll.u32 %s2024_s7, 4  ;;  %s2026_s10 = smov 4   ;;  %s40_s8 = int_to_ptr.vmem [resolvable:$true] %s39_s8 }
   0x8   :  { %45 = dma.hbm_to_vmem [thread:$0]  %s38_s28, 8192, %s40_s8, [#allocation8], %s2025_s9, %s2025_s9, %s2026_s10  }
   0x9   :  { %2015 = dma.done.wait [#allocation5], 1024  }
   0xa   :  { %2016 = vsyncadd [#allocation5], 4294966272 }
   0xb   :  { %2017 = dma.done.wait [#allocation8], 8192  }
   0xc   :  { %2018 = vsyncadd [#allocation8], 4294959104  ;;  %v2071_v0 = vld [vmem:[#allocation7 + $0xb8] sm:$0xff]  ;;  %v2079_v3 = vld [vmem:[#allocation7 + $0xb0] sm:$0xff]  ;;  %vm1045_vm0 = vcmask 1040384   ;;  %vm996_vm1 = vcmask 203776  }
   0xd   :  { %v2073_v1 = vld [vmem:[#allocation7 + $0x38] sm:$0xff]  ;;  %704 = vmatpush.bf16.msra.mxu3 %v2071_v0  ;;  %v2081_v4 = vld [vmem:[#allocation7 + $0x30] sm:$0xff]  ;;  %v2088_v6 = vld [vmem:[#allocation7 + $0xa8] sm:$0xff]  ;;  %vm1358_vm2 = vcmask 1046528   ;;  %s2027_s28 = smov [#allocation9]   ;;  %s2029_s8 = smov 8  }
   0xe   :  { %v2075_v2 = vld [vmem:[#allocation7 + $0x78] sm:$0xff]  ;;  %666 = vmatpush.bf16.msra.mxu0 %v2073_v1  ;;  %v2084_v5 = vld [vmem:[#allocation7 + $0x70] sm:$0xff]  ;;  %v2090_v7 = vld [vmem:[#allocation7 + $0x28] sm:$0xff]  ;;  %s1421_s29 = sshll.u32 %s2027_s28, 4  ;;  %s1422_s29 = int_to_ptr.vmem [resolvable:$true] %s1421_s29 }
   0xf   :  { %685 = vmatpush.bf16.msra.mxu1 %v2075_v2  ;;  %v2093_v8 = vld [vmem:[#allocation7 + $0x68] sm:$0xff]  ;;  %v2097_v9 = vld [vmem:[#allocation7 + $0xa0] sm:$0xff]  ;;  %v2101_v11 = vld [vmem:[#allocation7 + $0x1b8] sm:$0xff] }
  0x10   :  { %v2099_v10 = vld [vmem:[#allocation7 + $0x20] sm:$0xff]  ;;  %780 = vmatpush.bf16.msra.mxu2 %v2101_v11  ;;  %v2107_v13 = vld [vmem:[#allocation7 + $0x1b0] sm:$0xff]  ;;  %v2111_v14 = vld [vmem:[#allocation7 + $0x98] sm:$0xff] }
  0x11   :  { %705 = vmatpush.bf16.msra.mxu3 %v2079_v3  ;;  %v2104_v12 = vld [vmem:[#allocation7 + $0x60] sm:$0xff]  ;;  %v2113_v15 = vld [vmem:[#allocation7 + $0x18] sm:$0xff]  ;;  %v2119_v17 = vld [vmem:[#allocation7 + $0x1a8] sm:$0xff] }
  0x12   :  { %667 = vmatpush.bf16.msra.mxu0 %v2081_v4  ;;  %v2116_v16 = vld [vmem:[#allocation7 + $0x58] sm:$0xff]  ;;  %v2123_v18 = vld [vmem:[#allocation7 + $0x90] sm:$0xff]  ;;  %v2131_v21 = vld [vmem:[#allocation7 + $0x1a0] sm:$0xff] }
  0x13   :  { %686 = vmatpush.bf16.msra.mxu1 %v2084_v5  ;;  %v2125_v19 = vld [vmem:[#allocation7 + $0x10] sm:$0xff]  ;;  %v2135_v22 = vld [vmem:[#allocation7 + $0x88] sm:$0xff]  ;;  %v2142_v25 = vld [vmem:[#allocation7 + $0x80] sm:$0xff] }
  0x14   :  { %781 = vmatpush.bf16.msra.mxu2 %v2107_v13  ;;  %v2128_v20 = vld [vmem:[#allocation7 + $0x50] sm:$0xff]  ;;  %v2137_v23 = vld [vmem:[#allocation7 + $0x8] sm:$0xff]  ;;  %v2145_v26 = vld [vmem:[#allocation7 + $0x198] sm:$0xff] }
  0x15   :  { %706 = vmatpush.bf16.msra.mxu3 %v2088_v6  ;;  %v2140_v24 = vld [vmem:[#allocation7 + $0x48] sm:$0xff]  ;;  %v2153_v29 = vld [vmem:[#allocation7] sm:$0xff]  ;;  %v2166_v33 = vld [vmem:[#allocation7 + $0xf8] sm:$0xff] }
  0x16   :  { %668 = vmatpush.bf16.msra.mxu0 %v2090_v7  ;;  %v1447_v27 = vld [vmem:[%s2786_s1 + $0x8] sm:$0xf]  ;;  %v2157_v30 = vld [vmem:[#allocation7 + $0x40] sm:$0xff]  ;;  %v2174_v36 = vld [vmem:[#allocation7 + $0x138] sm:$0xff] }
  0x17   :  { %687 = vmatpush.bf16.msra.mxu1 %v2093_v8  ;;  %v1875_v28 = vld [vmem:[%s2786_s1 + $0x24] sm:$0xf0]  ;;  %v1439_v31 = vld [vmem:[%s2786_s1] sm:$0xf]  ;;  %v1870_v34 = vld [vmem:[%s2786_s1 + $0x4] sm:$0xf] }
  0x18   :  { %782 = vmatpush.bf16.msra.mxu2 %v2119_v17  ;;  %v1874_v32 = vld [vmem:[%s2786_s1 + $0x1c] sm:$0xf0]  ;;  %v1441_v35 = vld [vmem:[%s2786_s1 + $0x20] sm:$0xf0]  ;;  %v2176_v37 = vld [vmem:[#allocation7 + $0x178] sm:$0xff]  ;;  %v1448_v38 = vor.u32 %v1875_v28, %v1447_v27 }
  0x19   :  { %707 = vmatpush.bf16.msra.mxu3 %v2097_v9  ;;  %v1440_v39 = vor.u32 %v1874_v32, %v1439_v31  ;;  %v1444_v40 = vor.u32 %v1870_v34, %v1441_v35  ;;  %v2181_v41 = vld [vmem:[#allocation7 + $0x190] sm:$0xff]  ;;  %v2194_v45 = vld [vmem:[#allocation7 + $0x188] sm:$0xff]  ;;  %v2206_v49 = vld [vmem:[#allocation7 + $0x180] sm:$0xff] }
  0x1a   :  { %669 = vmatpush.bf16.msra.mxu0 %v2099_v10  ;;  %v2185_v42 = vld [vmem:[#allocation7 + $0xf0] sm:$0xff]  ;;  %v2197_v46 = vld [vmem:[#allocation7 + $0xe8] sm:$0xff]  ;;  %v1463_v50 = vld [vmem:[%s2786_s1 + $0x18] sm:$0xf] }
  0x1b   :  { %688 = vmatpush.bf16.msra.mxu1 %v2104_v12  ;;  %v2189_v43 = vld [vmem:[#allocation7 + $0x130] sm:$0xff]  ;;  %v2201_v47 = vld [vmem:[#allocation7 + $0x128] sm:$0xff]  ;;  %v1877_v51 = vld [vmem:[%s2786_s1 + $0x34] sm:$0xf0] }
  0x1c   :  { %783 = vmatpush.bf16.msra.mxu2 %v2131_v21  ;;  %v2191_v44 = vld [vmem:[#allocation7 + $0x170] sm:$0xff]  ;;  %v2203_v48 = vld [vmem:[#allocation7 + $0x168] sm:$0xff]  ;;  %v2215_v52 = vld [vmem:[#allocation7 + $0xe0] sm:$0xff]  ;;  %v1464_v56 = vor.u32 %v1877_v51, %v1463_v50 }
  0x1d   :  { %708 = vmatpush.bf16.msra.mxu3 %v2111_v14  ;;  %v2219_v53 = vld [vmem:[#allocation7 + $0x120] sm:$0xff]  ;;  %v1479_v55 = vld [vmem:[%s2786_s1 + $0x48] sm:$0xf]  ;;  %v2237_v60 = vld [vmem:[#allocation7 + $0xd8] sm:$0xff] }
  0x1e   :  { %670 = vmatpush.bf16.msra.mxu0 %v2113_v15  ;;  %v2221_v54 = vld [vmem:[#allocation7 + $0x160] sm:$0xff]  ;;  %v1883_v57 = vld [vmem:[%s2786_s1 + $0x64] sm:$0x10]  ;;  %v2248_v63 = vld [vmem:[#allocation7 + $0x118] sm:$0xff] }
  0x1f   :  { %689 = vmatpush.bf16.msra.mxu1 %v2116_v16  ;;  %v1471_v58 = vld [vmem:[%s2786_s1 + $0x40] sm:$0xf]  ;;  %v1878_v61 = vld [vmem:[%s2786_s1 + $0x44] sm:$0xf]  ;;  %v2250_v27 = vld [vmem:[#allocation7 + $0x158] sm:$0xff]  ;;  %v1480_v28 = vor.u32 %v1883_v57, %v1479_v55 }
  0x20   :  { %784 = vmatpush.bf16.msra.mxu2 %v2145_v26  ;;  %v1882_v59 = vld [vmem:[%s2786_s1 + $0x5c] sm:$0x10]  ;;  %v1473_v62 = vld [vmem:[%s2786_s1 + $0x60] sm:$0x10]  ;;  %v2253_v34 = vld [vmem:[#allocation7 + $0xd0] sm:$0xff] }
  0x21   :  { %709 = vmatpush.bf16.msra.mxu3 %v2123_v18  ;;  %v1472_v31 = vor.u32 %v1882_v59, %v1471_v58  ;;  %v1476_v32 = vor.u32 %v1878_v61, %v1473_v62  ;;  %v2260_v35 = vld [vmem:[#allocation7 + $0x150] sm:$0xff]  ;;  %v1885_v50 = vld [vmem:[%s2786_s1 + $0x74] sm:$0x10]  ;;  %v2279_v51 = vld [vmem:[#allocation7 + $0xc0] sm:$0xff] }
  0x22   :  { %671 = vmatpush.bf16.msra.mxu0 %v2125_v19  ;;  %v2286_v55 = vld [vmem:[#allocation7 + $0x100] sm:$0xff]  ;;  %v1449_v59 = vld [vmem:[%s2786_s1 + $0x28] sm:$0xf0]  ;;  %v1876_v61 = vld [vmem:[%s2786_s1 + $0x2c] sm:$0xf0] }
  0x23   :  { %690 = vmatpush.bf16.msra.mxu1 %v2128_v20  ;;  %v2291_v57 = vld [vmem:[#allocation7 + $0x140] sm:$0xff]  ;;  %v1872_v62 = vld [vmem:[%s2786_s1 + $0x14] sm:$0xf] }
  0x24   :  { %785 = vmatpush.bf16.msra.mxu2 %v2181_v41 }
  0x25   :  { %710 = vmatpush.bf16.msra.mxu3 %v2135_v22 }
  0x26   :  { %672 = vmatpush.bf16.msra.mxu0 %v2137_v23 }
  0x27   :  { %691 = vmatpush.bf16.msra.mxu1 %v2140_v24 }
  0x28   :  { %786 = vmatpush.bf16.msra.mxu2 %v2194_v45 }
  0x29   :  { %711 = vmatpush.bf16.msra.mxu3 %v2142_v25 }
  0x2a   :  { %673 = vmatpush.bf16.msra.mxu0 %v2153_v29 }
  0x2b   :  { %692 = vmatpush.bf16.msra.mxu1 %v2157_v30 }
  0x2c   :  { %712 = vmatmul.bf16.vlgmr.msra.gmra.mxu3 %v1448_v38  ;;  %787 = vmatpush.bf16.msra.mxu2 %v2206_v49  ;;  %v2263_v38 = vld [vmem:[#allocation7 + $0xc8] sm:$0xff] }
  0x2d   :  { %723 = vmatpush.bf16.msrb.mxu3 %v2166_v33  ;;  %674 = vmatmul.bf16.vlgmr.msra.gmra.mxu0 %v1440_v39  ;;  %v2270_v39 = vld [vmem:[#allocation7 + $0x148] sm:$0xff] }
  0x2e   :  { %742 = vmatpush.bf16.msrb.mxu0 %v2174_v36  ;;  %693 = vmatmul.bf16.vlgmr.msra.gmra.mxu1 %v1444_v40  ;;  %v1495_v40 = vld [vmem:[%s2786_s1 + $0x58] sm:$0xf] }
  0x2f   :  { %761 = vmatpush.bf16.msrb.mxu1 %v2176_v37  ;;  %788 = vmatmul.bf16.vlgmr.msra.gmra.mxu2 %v1464_v56  ;;  %v1871_v56 = vld [vmem:[%s2786_s1 + $0xc] sm:$0xf]  ;;  %v1496_v58 = vor.u32 %v1885_v50, %v1495_v40 }
  0x30   :  { %894 = vmatpush.bf16.msrb.mxu2 %v2071_v0  ;;  %v2258_v0 = vld [vmem:[#allocation7 + $0x110] sm:$0xff] }
  0x31   :  { %724 = vmatpush.bf16.msrb.mxu3 %v2185_v42 }
  0x32   :  { %743 = vmatpush.bf16.msrb.mxu0 %v2189_v43 }
  0x33   :  { %762 = vmatpush.bf16.msrb.mxu1 %v2191_v44 }
  0x34   :  { %895 = vmatpush.bf16.msrb.mxu2 %v2079_v3  ;;  %v2268_v3 = vld [vmem:[#allocation7 + $0x108] sm:$0xff] }
  0x35   :  { %725 = vmatpush.bf16.msrb.mxu3 %v2197_v46 }
  0x36   :  { %744 = vmatpush.bf16.msrb.mxu0 %v2201_v47 }
  0x37   :  { %763 = vmatpush.bf16.msrb.mxu1 %v2203_v48 }
  0x38   :  { %896 = vmatpush.bf16.msrb.mxu2 %v2088_v6  ;;  %v2283_v6 = vld [vmem:[#allocation7 + $0x1f8] sm:$0xff] }
  0x39   :  { %726 = vmatpush.bf16.msrb.mxu3 %v2215_v52 }
  0x3a   :  { %745 = vmatpush.bf16.msrb.mxu0 %v2219_v53 }
  0x3b   :  { %764 = vmatpush.bf16.msrb.mxu1 %v2221_v54 }
  0x3c   :  { %717 = vmatmul.bf16.gmra.mxu3 %v1480_v28  ;;  %897 = vmatpush.bf16.msrb.mxu2 %v2097_v9  ;;  %v1455_v9 = vld [vmem:[%s2786_s1 + $0x10] sm:$0xf]  ;;  %v1457_v28 = vld [vmem:[%s2786_s1 + $0x30] sm:$0xf0] }
  0x3d   :  { %727 = vmatpush.bf16.msrb.mxu3 %v2237_v60  ;;  %679 = vmatmul.bf16.gmra.mxu0 %v1472_v31  ;;  %v2312_v31 = vld [vmem:[#allocation7 + $0x1f0] sm:$0xff]  ;;  %v1456_v40 = vor.u32 %v1876_v61, %v1455_v9  ;;  %v1460_v50 = vor.u32 %v1872_v62, %v1457_v28 }
  0x3e   :  { %746 = vmatpush.bf16.msrb.mxu0 %v2248_v63  ;;  %698 = vmatmul.bf16.gmra.mxu1 %v1476_v32  ;;  %v1452_v32 = vor.u32 %v1871_v56, %v1449_v59 }
  0x3f   :  { %765 = vmatpush.bf16.msrb.mxu1 %v2250_v27  ;;  %793 = vmatmul.bf16.gmra.mxu2 %v1496_v58 }
  0x40   :  { %898 = vmatpush.bf16.msrb.mxu2 %v2111_v14  ;;  %v2319_v14 = vld [vmem:[#allocation7 + $0x1e8] sm:$0xff] }
  0x41   :  { %728 = vmatpush.bf16.msrb.mxu3 %v2253_v34 }
  0x42   :  { %747 = vmatpush.bf16.msrb.mxu0 %v2258_v0 }
  0x43   :  { %766 = vmatpush.bf16.msrb.mxu1 %v2260_v35 }
  0x44   :  { %899 = vmatpush.bf16.msrb.mxu2 %v2123_v18  ;;  %v1489_v18 = vld [vmem:[%s2786_s1 + $0x70] sm:$0x10] }
  0x45   :  { %729 = vmatpush.bf16.msrb.mxu3 %v2263_v38 }
  0x46   :  { %748 = vmatpush.bf16.msrb.mxu0 %v2268_v3 }
  0x47   :  { %767 = vmatpush.bf16.msrb.mxu1 %v2270_v39 }
  0x48   :  { %900 = vmatpush.bf16.msrb.mxu2 %v2135_v22  ;;  %v2355_v22 = vld [vmem:[#allocation7 + $0x1d0] sm:$0xff] }
  0x49   :  { %730 = vmatpush.bf16.msrb.mxu3 %v2279_v51 }
  0x4a   :  { %749 = vmatpush.bf16.msrb.mxu0 %v2286_v55 }
  0x4b   :  { %768 = vmatpush.bf16.msrb.mxu1 %v2291_v57 }
  0x4c   :  { %731 = vmatmul.bf16.vlgmr.msrb.gmra.mxu3 %v1452_v32  ;;  %901 = vmatpush.bf16.msrb.mxu2 %v2142_v25 }
  0x4d   :  { %799 = vmatpush.bf16.msra.mxu3 %v2283_v6  ;;  %750 = vmatmul.bf16.vlgmr.msrb.gmra.mxu0 %v1456_v40 }
  0x4e   :  { %866 = vmatpush.bf16.msra.mxu0 %v2073_v1  ;;  %769 = vmatmul.bf16.vlgmr.msrb.gmra.mxu1 %v1460_v50  ;;  %v2325_v1 = vld [vmem:[#allocation7 + $0x1e0] sm:$0xff] }
  0x4f   :  { %880 = vmatpush.bf16.msra.mxu1 %v2075_v2  ;;  %v2331_v2 = vld [vmem:[#allocation7 + $0x1d8] sm:$0xff] }
  0x50   :  { %950 = vmatpush.bf16.msra.mxu2 %v2101_v11  ;;  %v1880_v11 = vld [vmem:[%s2786_s1 + $0x54] sm:$0xf] }
  0x51   :  { %800 = vmatpush.bf16.msra.mxu3 %v2312_v31  ;;  %v1492_v58 = vor.u32 %v1880_v11, %v1489_v18 }
  0x52   :  { %867 = vmatpush.bf16.msra.mxu0 %v2081_v4  ;;  %v1879_v4 = vld [vmem:[%s2786_s1 + $0x4c] sm:$0xf] }
  0x53   :  { %881 = vmatpush.bf16.msra.mxu1 %v2084_v5  ;;  %v1481_v5 = vld [vmem:[%s2786_s1 + $0x68] sm:$0x10] }
  0x54   :  { %951 = vmatpush.bf16.msra.mxu2 %v2107_v13  ;;  %v1484_v25 = vor.u32 %v1879_v4, %v1481_v5  ;;  %v1873_v13 = vld [vmem:[%s2786_s1 + $0x1c] sm:$0xf] }
  0x55   :  { %801 = vmatpush.bf16.msra.mxu3 %v2319_v14 }
  0x56   :  { %868 = vmatpush.bf16.msra.mxu0 %v2090_v7  ;;  %v1487_v7 = vld [vmem:[%s2786_s1 + $0x50] sm:$0xf] }
  0x57   :  { %882 = vmatpush.bf16.msra.mxu1 %v2093_v8  ;;  %v1884_v8 = vld [vmem:[%s2786_s1 + $0x6c] sm:$0x10] }
  0x58   :  { %v1488_v56 = vor.u32 %v1884_v8, %v1487_v7  ;;  %952 = vmatpush.bf16.msra.mxu2 %v2119_v17  ;;  %v1881_v17 = vld [vmem:[%s2786_s1 + $0x5c] sm:$0xf] }
  0x59   :  { %802 = vmatpush.bf16.msra.mxu3 %v2325_v1 }
  0x5a   :  { %869 = vmatpush.bf16.msra.mxu0 %v2099_v10  ;;  %v1863_v10 = vld [vmem:[#allocation7 + $0x1c8] sm:$0xff] }
  0x5b   :  { %883 = vmatpush.bf16.msra.mxu1 %v2104_v12  ;;  %v1862_v12 = vld [vmem:[#allocation7 + $0x1c0] sm:$0xff] }
  0x5c   :  { %736 = vmatmul.bf16.gmra.mxu3 %v1484_v25  ;;  %953 = vmatpush.bf16.msra.mxu2 %v2131_v21 }
  0x5d   :  { %803 = vmatpush.bf16.msra.mxu3 %v2331_v2  ;;  %755 = vmatmul.bf16.gmra.mxu0 %v1488_v56 }
  0x5e   :  { %870 = vmatpush.bf16.msra.mxu0 %v2113_v15  ;;  %774 = vmatmul.bf16.gmra.mxu1 %v1492_v58  ;;  %v1465_v15 = vld [vmem:[%s2786_s1 + $0x38] sm:$0xf0] }
  0x5f   :  { %884 = vmatpush.bf16.msra.mxu1 %v2116_v16  ;;  %v1468_v16 = vor.u32 %v1873_v13, %v1465_v15 }
  0x60   :  { %954 = vmatpush.bf16.msra.mxu2 %v2145_v26 }
  0x61   :  { %804 = vmatpush.bf16.msra.mxu3 %v2355_v22 }
  0x62   :  { %871 = vmatpush.bf16.msra.mxu0 %v2125_v19  ;;  %v1497_v19 = vld [vmem:[%s2786_s1 + $0x78] sm:$0x10] }
  0x63   :  { %885 = vmatpush.bf16.msra.mxu1 %v2128_v20  ;;  %v1500_v20 = vor.u32 %v1881_v17, %v1497_v19 }
  0x64   :  { %955 = vmatpush.bf16.msra.mxu2 %v2181_v41  ;;  %v1890_v41 = vld [vmem:[#allocation4 + $0x1c] sm:$0xf0] }
  0x65   :  { %805 = vmatpush.bf16.msra.mxu3 %v1863_v10 }
  0x66   :  { %872 = vmatpush.bf16.msra.mxu0 %v2137_v23 }
  0x67   :  { %886 = vmatpush.bf16.msra.mxu1 %v2140_v24 }
  0x68   :  { %956 = vmatpush.bf16.msra.mxu2 %v2194_v45  ;;  %v1769_v45 = vld [vmem:[#allocation4 + $0x28] sm:$0xf0] }
  0x69   :  { %806 = vmatpush.bf16.msra.mxu3 %v1862_v12 }
  0x6a   :  { %873 = vmatpush.bf16.msra.mxu0 %v2153_v29  ;;  %v1767_v29 = vld [vmem:[#allocation4 + $0x8] sm:$0xf] }
  0x6b   :  { %887 = vmatpush.bf16.msra.mxu1 %v2157_v30  ;;  %v1891_v30 = vld [vmem:[#allocation4 + $0x24] sm:$0xf0] }
  0x6c   :  { %807 = vmatmul.bf16.vlgmr.msra.gmra.mxu3 %v1468_v16  ;;  %957 = vmatpush.bf16.msra.mxu2 %v2206_v49 }
  0x6d   :  { %908 = vmatpush.bf16.msrb.mxu3 %v2166_v33 }
  0x6e   :  { %922 = vmatpush.bf16.msrb.mxu0 %v2174_v36  ;;  %v1768_v36 = vor.u32 %v1891_v30, %v1767_v29 }
  0x6f   :  { %936 = vmatpush.bf16.msrb.mxu1 %v2176_v37  ;;  %v1759_v37 = vld [vmem:[#allocation4] sm:$0xf] }
  0x70   :  { %902 = vmatmul.bf16.vlgmr.msrb.gmra.mxu2 %v1768_v36 }
  0x71   :  { %909 = vmatpush.bf16.msrb.mxu3 %v2185_v42  ;;  %v1887_v42 = vld [vmem:[#allocation4 + $0xc] sm:$0xf] }
  0x72   :  { %923 = vmatpush.bf16.msrb.mxu0 %v2189_v43 }
  0x73   :  { %937 = vmatpush.bf16.msrb.mxu1 %v2191_v44  ;;  %v1760_v44 = vor.u32 %v1890_v41, %v1759_v37 }
  0x75   :  { %910 = vmatpush.bf16.msrb.mxu3 %v2197_v46  ;;  %v1772_v46 = vor.u32 %v1887_v42, %v1769_v45  ;;  %874 = vmatmul.bf16.vlgmr.msra.gmra.mxu0 %v1760_v44 }
  0x76   :  { %924 = vmatpush.bf16.msrb.mxu0 %v2201_v47  ;;  %v1886_v47 = vld [vmem:[#allocation4 + $0x4] sm:$0xf] }
  0x77   :  { %938 = vmatpush.bf16.msrb.mxu1 %v2203_v48  ;;  %v1761_v48 = vld [vmem:[#allocation4 + $0x20] sm:$0xf0] }
  0x78   :  { %v1764_v49 = vor.u32 %v1886_v47, %v1761_v48 }
  0x79   :  { %911 = vmatpush.bf16.msrb.mxu3 %v2215_v52 }
  0x7a   :  { %925 = vmatpush.bf16.msrb.mxu0 %v2219_v53  ;;  %888 = vmatmul.bf16.vlgmr.msra.gmra.mxu1 %v1764_v49 }
  0x7b   :  { %939 = vmatpush.bf16.msrb.mxu1 %v2221_v54 }
  0x7c   :  { %812 = vmatmul.bf16.gmra.mxu3 %v1500_v20 }
  0x7d   :  { %912 = vmatpush.bf16.msrb.mxu3 %v2237_v60  ;;  %v1783_v60 = vld [vmem:[#allocation4 + $0x18] sm:$0xf] }
  0x7e   :  { %926 = vmatpush.bf16.msrb.mxu0 %v2248_v63  ;;  %v1893_v63 = vld [vmem:[#allocation4 + $0x34] sm:$0xf0] }
  0x7f   :  { %940 = vmatpush.bf16.msrb.mxu1 %v2250_v27 }
  0x81   :  { %913 = vmatpush.bf16.msrb.mxu3 %v2253_v34 }
  0x82   :  { %927 = vmatpush.bf16.msrb.mxu0 %v2258_v0  ;;  %v1784_v0 = vor.u32 %v1893_v63, %v1783_v60  ;;  %v978_v60 = vld [vmem:[%s2785_s0] sm:$0xff]  ;;  %v985_v63 = vld [vmem:[%s2785_s0 + $0x38] sm:$0xff] }
  0x83   :  { %941 = vmatpush.bf16.msrb.mxu1 %v2260_v35  ;;  %v1775_v35 = vld [vmem:[#allocation4 + $0x10] sm:$0xf] }
  0x84   :  { %958 = vmatmul.bf16.vlgmr.msra.gmra.mxu2 %v1784_v0  ;;  %v980_v0 = vld [vmem:[%s2785_s0 + $0x10] sm:$0xff] }
  0x85   :  { %914 = vmatpush.bf16.msrb.mxu3 %v2263_v38  ;;  %v1892_v38 = vld [vmem:[#allocation4 + $0x2c] sm:$0xf0] }
  0x86   :  { %928 = vmatpush.bf16.msrb.mxu0 %v2268_v3  ;;  %v1889_v3 = vld [vmem:[#allocation4 + $0x1c] sm:$0xf] }
  0x87   :  { %942 = vmatpush.bf16.msrb.mxu1 %v2270_v39  ;;  %v1776_v39 = vor.u32 %v1892_v38, %v1775_v35  ;;  %v987_v35 = vld [vmem:[%s2785_s0 + $0x48] sm:$0xff]  ;;  %v981_v38 = vld [vmem:[%s2785_s0 + $0x18] sm:$0xff] }
  0x89   :  { %915 = vmatpush.bf16.msrb.mxu3 %v2279_v51  ;;  %v1785_v51 = vld [vmem:[#allocation4 + $0x38] sm:$0xf0] }
  0x8a   :  { %929 = vmatpush.bf16.msrb.mxu0 %v2286_v55  ;;  %v1888_v55 = vld [vmem:[#allocation4 + $0x14] sm:$0xf] }
  0x8b   :  { %943 = vmatpush.bf16.msrb.mxu1 %v2291_v57  ;;  %v1777_v57 = vld [vmem:[#allocation4 + $0x30] sm:$0xf0] }
  0x8c   :  { %916 = vmatmul.bf16.vlgmr.msrb.gmra.mxu3 %v1772_v46  ;;  %v1780_v59 = vor.u32 %v1888_v55, %v1777_v57  ;;  %v990_v55 = vld [vmem:[%s2785_s0 + $0x60] sm:$0xff] }
  0x8d   :  { %964 = vmatpush.bf16.msra.mxu3 %v2283_v6  ;;  %v1788_v6 = vor.u32 %v1889_v3, %v1785_v51  ;;  %930 = vmatmul.bf16.vlgmr.msrb.gmra.mxu0 %v1776_v39  ;;  %v988_v3 = vld [vmem:[%s2785_s0 + $0x50] sm:$0xff]  ;;  %v982_v39 = vld [vmem:[%s2785_s0 + $0x20] sm:$0xff]  ;;  %v989_v51 = vld [vmem:[%s2785_s0 + $0x58] sm:$0xff] }
  0x8e   :  { %944 = vmatmul.bf16.vlgmr.msrb.gmra.mxu1 %v1780_v59 }
  0x91   :  { %965 = vmatpush.bf16.msra.mxu3 %v2312_v31 }
  0x95   :  { %966 = vmatpush.bf16.msra.mxu3 %v2319_v14 }
  0x99   :  { %967 = vmatpush.bf16.msra.mxu3 %v2325_v1 }
  0x9d   :  { %968 = vmatpush.bf16.msra.mxu3 %v2331_v2 }
  0xa1   :  { %969 = vmatpush.bf16.msra.mxu3 %v2355_v22 }
  0xa5   :  { %970 = vmatpush.bf16.msra.mxu3 %v1863_v10 }
  0xa9   :  { %971 = vmatpush.bf16.msra.mxu3 %v1862_v12 }
  0xaa   :  { %v675_v23 = vpop.f32.mrf.mxu0 }
  0xab   :  { %v694_v26 = vpop.f32.mrf.mxu1 }
  0xac   :  { %972 = vmatmul.bf16.vlgmr.msra.gmra.mxu3 %v1788_v6  ;;  %v695_v58 = vadd.f32 %v694_v26, %v675_v23  ;;  %v983_v6 = vld [vmem:[%s2785_s0 + $0x28] sm:$0xff] }
  0xaf   :  { %v2415_v21 = vpop.f32.mrf.mxu3 }
  0xb0   :  { %v714_v17 = vadd.f32 %v2415_v21, %v695_v58  ;;  %v993_v58 = vld [vmem:[%s2785_s0 + $0x78] sm:$0xff] }
  0xb2   :  { %v677_v43 = vpop.f32.mrf.mxu0  ;;  %v789_v40 = vpop.f32.mrf.mxu2 }
  0xb3   :  { %v696_v52 = vpop.f32.mrf.mxu1 }
  0xb4   :  { %v697_v22 = vadd.f32 %v696_v52, %v677_v43 }
  0xb7   :  { %v2417_v24 = vpop.f32.mrf.mxu3 }
  0xb8   :  { %v716_v15 = vadd.f32 %v2417_v24, %v697_v22 }
  0xba   :  { %v680_v54 = vpop.f32.mrf.mxu0  ;;  %v791_v2 = vpop.f32.mrf.mxu2 }
  0xbb   :  { %v699_v27 = vpop.f32.mrf.mxu1 }
  0xbc   :  { %v700_v11 = vadd.f32 %v699_v27, %v680_v54  ;;  %v984_v54 = vld [vmem:[%s2785_s0 + $0x30] sm:$0xff]  ;;  %v979_v27 = vld [vmem:[%s2785_s0 + $0x8] sm:$0xff] }
  0xbf   :  { %v718_v33 = vpop.f32.mrf.mxu3 }
  0xc0   :  { %v719_v10 = vadd.f32 %v718_v33, %v700_v11 }
  0xc2   :  { %v682_v9 = vpop.f32.mrf.mxu0  ;;  %v794_v56 = vpop.f32.mrf.mxu2 }
  0xc3   :  { %v701_v62 = vpop.f32.mrf.mxu1 }
  0xc4   :  { %v702_v7 = vadd.f32 %v701_v62, %v682_v9 }
  0xc7   :  { %v720_v53 = vpop.f32.mrf.mxu3 }
  0xc8   :  { %v721_v25 = vadd.f32 %v720_v53, %v702_v7 }
  0xca   :  { %v751_v28 = vpop.f32.mrf.mxu0  ;;  %v796_v43 = vpop.f32.mrf.mxu2 }
  0xcb   :  { %v770_v32 = vpop.f32.mrf.mxu1 }
  0xcf   :  { %v732_v34 = vpop.f32.mrf.mxu3 }
  0xd0   :  { %v733_v36 = vadd.f32 %v732_v34, %v714_v17  ;;  %v986_v34 = vld [vmem:[%s2785_s0 + $0x40] sm:$0xff] }
  0xd2   :  { %v753_v50 = vpop.f32.mrf.mxu0  ;;  %v752_v44 = vadd.f32 %v751_v28, %v733_v36  ;;  %v991_v28 = vld [vmem:[%s2785_s0 + $0x68] sm:$0xff] }
  0xd3   :  { %v772_v1 = vpop.f32.mrf.mxu1 }
  0xd4   :  { %v771_v46 = vadd.f32 %v770_v32, %v752_v44 }
  0xd6   :  { %v790_v49 = vadd.f32 %v789_v40, %v771_v46 }
  0xd7   :  { %v734_v61 = vpop.f32.mrf.mxu3 }
  0xd8   :  { %v735_v19 = vadd.f32 %v734_v61, %v716_v15 }
  0xda   :  { %v756_v5 = vpop.f32.mrf.mxu0  ;;  %v754_v41 = vadd.f32 %v753_v50, %v735_v19 }
  0xdb   :  { %v775_v8 = vpop.f32.mrf.mxu1 }
  0xdc   :  { %v773_v23 = vadd.f32 %v772_v1, %v754_v41 }
  0xde   :  { %v792_v48 = vadd.f32 %v791_v2, %v773_v23  ;;  %v992_v2 = vld [vmem:[%s2785_s0 + $0x70] sm:$0xff] }
  0xdf   :  { %v737_v31 = vpop.f32.mrf.mxu3 }
  0xe0   :  { %v738_v16 = vadd.f32 %v737_v31, %v719_v10 }
  0xe2   :  { %v758_v13 = vpop.f32.mrf.mxu0  ;;  %v757_v37 = vadd.f32 %v756_v5, %v738_v16 }
  0xe3   :  { %v777_v29 = vpop.f32.mrf.mxu1 }
  0xe4   :  { %v776_v45 = vadd.f32 %v775_v8, %v757_v37 }
  0xe6   :  { %v795_v24 = vadd.f32 %v794_v56, %v776_v45 }
  0xe7   :  { %v739_v14 = vpop.f32.mrf.mxu3 }
  0xe8   :  { %v740_v12 = vadd.f32 %v739_v14, %v721_v25 }
  0xea   :  { %v759_v20 = vadd.f32 %v758_v13, %v740_v12 }
  0xec   :  { %v778_v42 = vadd.f32 %v777_v29, %v759_v20 }
  0xee   :  { %v797_v26 = vadd.f32 %v796_v43, %v778_v42 }
  0xef   :  { %v808_v4 = vpop.f32.mrf.mxu3 }
  0xf0   :  { %v809_v53 = vadd.f32 %v808_v4, %v790_v49 }
  0xf2   :  { %v875_v57 = vpop.f32.mrf.mxu0 }
  0xf3   :  { %v903_v61 = vpop.f32.mrf.mxu2 }
  0xf7   :  { %v810_v18 = vpop.f32.mrf.mxu3  ;;  %v889_v59 = vpop.f32.mrf.mxu1 }
  0xf8   :  { %v811_v52 = vadd.f32 %v810_v18, %v792_v48  ;;  %v890_v9 = vadd.f32 %v889_v59, %v875_v57 }
  0xfa   :  { %v904_v62 = vadd.f32 %v903_v61, %v890_v9  ;;  %v877_v31 = vpop.f32.mrf.mxu0 }
  0xfb   :  { %v905_v50 = vpop.f32.mrf.mxu2 }
  0xff   :  { %v813_v30 = vpop.f32.mrf.mxu3  ;;  %v891_v40 = vpop.f32.mrf.mxu1 }
 0x100   :  { %v814_v21 = vadd.f32 %v813_v30, %v795_v24  ;;  %v892_v1 = vadd.f32 %v891_v40, %v877_v31 }
 0x102   :  { %v906_v5 = vadd.f32 %v905_v50, %v892_v1 }
 0x107   :  { %v815_v33 = vpop.f32.mrf.mxu3  ;;  %v959_v22 = vpop.f32.mrf.mxu2 }
 0x108   :  { %v816_v47 = vadd.f32 %v815_v33, %v797_v26 }
 0x10a   :  { %1789 = vmatpush.msk.msra.mxu0 %vm1045_vm0, %v816_v47  ;;  %1894 = vmatpush.msk.msrb.mxu2 %vm1045_vm0, %v816_v47  ;;  %v931_v4 = vpop.f32.mrf.mxu0 }
 0x10b   :  { %v945_v8 = vpop.f32.mrf.mxu1 }
 0x10c   :  { %1062 = vmatpush.msra.mxu0 %v814_v21  ;;  %1895 = vmatpush.msrb.mxu2 %v814_v21 }
 0x10e   :  { %1063 = vmatpush.msra.mxu0 %v811_v52  ;;  %1896 = vmatpush.msrb.mxu2 %v811_v52 }
 0x10f   :  { %v917_v32 = vpop.f32.mrf.mxu3  ;;  %v961_v16 = vpop.f32.mrf.mxu2 }
 0x110   :  { %1064 = vmatpush.msra.mxu0 %v809_v53  ;;  %1897 = vmatpush.msrb.mxu2 %v809_v53  ;;  %v918_v14 = vadd.f32 %v917_v32, %v904_v62 }
 0x111   :  { %1796 = vmatmul.msk.f32.vlgmr.msrb.gmra.mxu2 %vm996_vm1, %v984_v54  ;;  %1790 = vmatmul.msk.f32.vlgmr.msra.gmra.mxu0 %vm996_vm1, %v978_v60 }
 0x112   :  { %v932_v7 = vadd.f32 %v931_v4, %v918_v14  ;;  %v933_v10 = vpop.f32.mrf.mxu0 }
 0x113   :  { %v947_v13 = vpop.f32.mrf.mxu1 }
 0x114   :  { %v946_v11 = vadd.f32 %v945_v8, %v932_v7 }
 0x116   :  { %v960_v56 = vadd.f32 %v959_v22, %v946_v11 }
 0x117   :  { %v919_v18 = vpop.f32.mrf.mxu3 }
 0x118   :  { %v920_v25 = vadd.f32 %v919_v18, %v906_v5 }
 0x119   :  { %1797 = vmatmul.msk.f32.gmra.mxu2 %vm996_vm1, %v985_v63  ;;  %1791 = vmatmul.msk.f32.gmra.mxu0 %vm996_vm1, %v979_v27 }
 0x11a   :  { %v934_v12 = vadd.f32 %v933_v10, %v920_v25 }
 0x11c   :  { %v948_v15 = vadd.f32 %v947_v13, %v934_v12 }
 0x11e   :  { %v962_v17 = vadd.f32 %v961_v16, %v948_v15 }
 0x121   :  { %1798 = vmatmul.msk.f32.gmra.mxu2 %vm996_vm1, %v986_v34  ;;  %1792 = vmatmul.msk.f32.gmra.mxu0 %vm996_vm1, %v980_v0 }
 0x129   :  { %1799 = vmatmul.msk.f32.gmra.mxu2 %vm996_vm1, %v987_v35  ;;  %1793 = vmatmul.msk.f32.gmra.mxu0 %vm996_vm1, %v981_v38 }
 0x12f   :  { %v973_v48 = vpop.f32.mrf.mxu3 }
 0x131   :  { %1800 = vmatmul.msk.f32.gmra.mxu2 %vm996_vm1, %v988_v3  ;;  %1794 = vmatmul.msk.f32.gmra.mxu0 %vm996_vm1, %v982_v39 }
 0x137   :  { %v975_v53 = vpop.f32.mrf.mxu3 }
 0x138   :  { %v2533_v34 = vadd.f32 %v975_v53, %v962_v17 }
 0x139   :  { %1801 = vmatmul.msk.f32.gmra.mxu2 %vm996_vm1, %v989_v51  ;;  %1795 = vmatmul.msk.f32.gmra.mxu0 %vm996_vm1, %v983_v6 }
 0x13a   :  { %v1355_v38 = vmul.f32 %v2533_v34, %v2533_v34 }
 0x13c   :  { %v1359_v39 = vsel %vm1358_vm2, %v1355_v38, 0.0 }
 0x141   :  { %1802 = vmatmul.msk.f32.gmra.mxu2 %vm996_vm1, %v990_v55  ;;  %v2547_v55 = vadd.f32 %v973_v48, %v960_v56 }
 0x143   :  { %v1354_v59 = vmul.f32 %v2547_v55, %v2547_v55 }
 0x149   :  { %1803 = vmatmul.msk.f32.gmra.mxu2 %vm996_vm1, %v991_v28 }
 0x151   :  { %1804 = vmatmul.msk.f32.gmra.mxu2 %vm996_vm1, %v992_v2 }
 0x159   :  { %1805 = vmatmul.msk.f32.gmra.mxu2 %vm996_vm1, %v993_v58 }
 0x18e   :  { %v2491_v30 = vpop.f32.mrf.mxu0 }
 0x18f   :  { %v1114_v61 = vmul.f32 %v2491_v30, %v2491_v30 }
 0x194   :  { %v2485_v19 = vpop.f32.mrf.mxu2 }
 0x195   :  { %v1120_v57 = vmul.f32 %v2485_v19, %v2485_v19 }
 0x196   :  { %v2495_v37 = vpop.f32.mrf.mxu0 }
 0x197   :  { %v1115_v60 = vmul.f32 %v2495_v37, %v2495_v37 }
 0x19c   :  { %v2487_v20 = vpop.f32.mrf.mxu2 }
 0x19d   :  { %v1121_v46 = vmul.f32 %v2487_v20, %v2487_v20 }
 0x19e   :  { %v2501_v43 = vpop.f32.mrf.mxu0 }
 0x19f   :  { %v1116_v51 = vmul.f32 %v2501_v43, %v2501_v43 }
 0x1a4   :  { %v2489_v29 = vpop.f32.mrf.mxu2 }
 0x1a5   :  { %v1122_v63 = vmul.f32 %v2489_v29, %v2489_v29 }
 0x1a6   :  { %v2509_v26 = vpop.f32.mrf.mxu0 }
 0x1a7   :  { %v1117_v9 = vmul.f32 %v2509_v26, %v2509_v26 }
 0x1ac   :  { %v2493_v36 = vpop.f32.mrf.mxu2 }
 0x1ad   :  { %v1123_v6 = vmul.f32 %v2493_v36, %v2493_v36 }
 0x1ae   :  { %v2517_v47 = vpop.f32.mrf.mxu0 }
 0x1af   :  { %v1118_v21 = vmul.f32 %v2517_v47, %v2517_v47 }
 0x1b4   :  { %v2497_v41 = vpop.f32.mrf.mxu2 }
 0x1b5   :  { %v1124_v23 = vmul.f32 %v2497_v41, %v2497_v41 }
 0x1b6   :  { %v2535_v0 = vpop.f32.mrf.mxu0 }
 0x1b7   :  { %v1119_v35 = vmul.f32 %v2535_v0, %v2535_v0 }
 0x1bc   :  { %v2499_v42 = vpop.f32.mrf.mxu2 }
 0x1bd   :  { %v1125_v44 = vmul.f32 %v2499_v42, %v2499_v42 }
 0x1bf   :  { %1152 = vadd.xlane.f32.xlu2 %v1125_v44 }
 0x1c4   :  { %v2505_v45 = vpop.f32.mrf.mxu2 }
 0x1c5   :  { %v1126_v52 = vmul.f32 %v2505_v45, %v2505_v45 }
 0x1c7   :  { %1150 = vadd.xlane.f32.xlu2 %v1124_v23 }
 0x1cc   :  { %v2511_v33 = vpop.f32.mrf.mxu2 }
 0x1cd   :  { %v1127_v24 = vmul.f32 %v2511_v33, %v2511_v33 }
 0x1cf   :  { %1144 = vadd.xlane.f32.xlu2 %v1121_v46  ;;  %1156 = vadd.xlane.f32.xlu1 %v1127_v24 }
 0x1d4   :  { %v2521_v49 = vpop.f32.mrf.mxu2 }
 0x1d5   :  { %v1128_v3 = vmul.f32 %v2521_v49, %v2521_v49 }
 0x1d7   :  { %1154 = vadd.xlane.f32.xlu1 %v1126_v52  ;;  %1138 = vadd.xlane.f32.xlu2 %v1118_v21 }
 0x1dc   :  { %v2525_v54 = vpop.f32.mrf.mxu2 }
 0x1dd   :  { %v1129_v27 = vmul.f32 %v2525_v54, %v2525_v54 }
 0x1df   :  { %1146 = vadd.xlane.f32.xlu1 %v1122_v63  ;;  %1160 = vadd.xlane.f32.xlu0 %v1129_v27 }
 0x1e0   :  { %1132 = vadd.xlane.f32.xlu2 %v1115_v60 }
 0x1e7   :  { %1158 = vadd.xlane.f32.xlu0 %v1128_v3  ;;  %1140 = vadd.xlane.f32.xlu1 %v1119_v35 }
 0x1e8   :  { %1360 = vadd.xlane.f32.xlu2 %v1359_v39 }
 0x1ef   :  { %1148 = vadd.xlane.f32.xlu0 %v1123_v6  ;;  %1134 = vadd.xlane.f32.xlu1 %v1116_v51 }
 0x1f7   :  { %1142 = vadd.xlane.f32.xlu0 %v1120_v57  ;;  %1356 = vadd.xlane.f32.xlu1 %v1354_v59 }
 0x1ff   :  { %1136 = vadd.xlane.f32.xlu0 %v1117_v9 }
 0x207   :  { %1130 = vadd.xlane.f32.xlu0 %v1114_v61 }
 0x232   :  { %v1153_v28 = vpop.xlane.xlu2 %1152 }
 0x233   :  { %v2562_v1 = vmax.f32 %v1153_v28, 1e-24 }
 0x235   :  { %vm1294_vm0 = vweird.f32 %v2562_v1 }
 0x23a   :  { %v1151_v4 = vpop.xlane.xlu2 %1150 }
 0x23b   :  { %v2568_v5 = vmax.f32 %v1151_v4, 1e-24 }
 0x242   :  { %v1157_v62 = vpop.xlane.xlu1 %1156  ;;  %v1145_v17 = vpop.xlane.xlu2 %1144 }
 0x243   :  { %v2557_v31 = vmax.f32 %v1157_v62, 1e-24  ;;  %v2589_v63 = vmax.f32 %v1145_v17, 1e-24 }
 0x245   :  { %1907 = vrsqrt.f32 %v2557_v31  ;;  %vm1314_vm10 = vweird.f32 %v2557_v31 }
 0x24a   :  { %v1155_v32 = vpop.xlane.xlu1 %1154 }
 0x24b   :  { %v2560_v50 = vmax.f32 %v1155_v32, 1e-24  ;;  %v2564_v2 = vpop.eup %1907 }
 0x24c   :  { %v1309_v7 = vmul.f32 %v2564_v2, %v2557_v31  ;;  %vm1315_vm7 = vweird.f32 %v2564_v2 }
 0x24d   :  { %vm2616_vm11 = vmor %vm1314_vm10, %vm1315_vm7  ;;  %vm1304_vm13 = vweird.f32 %v2560_v50 }
 0x24e   :  { %v1310_v56 = vmul.f32 %v2564_v2, %v1309_v7 }
 0x250   :  { %v1311_v44 = vmul.f32 0.5, %v1310_v56 }
 0x252   :  { %v1161_v40 = vpop.xlane.xlu0 %1160  ;;  %v1147_v13 = vpop.xlane.xlu1 %1146  ;;  %v1312_v39 = vsub.f32 1.5, %v1311_v44 }
 0x253   :  { %v1177_v14 = vmax.f32 %v1161_v40, 1e-24  ;;  %v2582_v24 = vmax.f32 %v1147_v13, 1e-24 }
 0x254   :  { %v1313_v4 = vmul.f32 %v2564_v2, %v1312_v39 }
 0x255   :  { %1909 = vrsqrt.f32 %v1177_v14  ;;  %vm1334_vm4 = vweird.f32 %v1177_v14  ;;  %vm1264_vm10 = vweird.f32 %v2582_v24 }
 0x256   :  { %1911 = vrsqrt.f32 %v2560_v50  ;;  %v1317_v44 = vsel %vm2616_vm11, %v2564_v2, %v1313_v4 }
 0x257   :  { %1913 = vrsqrt.f32 %v2562_v1  ;;  %v1351_v2 = vmul.f32 %v1317_v44, %v2511_v33 }
 0x25a   :  { %v1159_v8 = vpop.xlane.xlu0 %1158  ;;  %v1141_v40 = vpop.xlane.xlu1 %1140 }
 0x25b   :  { %v1176_v11 = vmax.f32 %v1159_v8, 1e-24  ;;  %v1910_v18 = vpop.eup %1909  ;;  %v2610_v56 = vmax.f32 %v1141_v40, 1e-24 }
 0x25c   :  { %v2572_v22 = vpop.eup %1911  ;;  %v1329_v25 = vmul.f32 %v1910_v18, %v1177_v14  ;;  %vm1335_vm3 = vweird.f32 %v1910_v18 }
 0x25d   :  { %1915 = vrsqrt.f32 %v1176_v11  ;;  %v2576_v58 = vpop.eup %1913  ;;  %v1299_v12 = vmul.f32 %v2572_v22, %v2560_v50  ;;  %vm1336_vm5 = vmor %vm1334_vm4, %vm1335_vm3  ;;  %vm1324_vm8 = vweird.f32 %v1176_v11  ;;  %vm1305_vm12 = vweird.f32 %v2572_v22 }
 0x25e   :  { %1917 = vrsqrt.f32 %v2568_v5  ;;  %v1330_v10 = vmul.f32 %v1910_v18, %v1329_v25  ;;  %v1289_v16 = vmul.f32 %v2576_v58, %v2562_v1  ;;  %vm1295_vm14 = vweird.f32 %v2576_v58  ;;  %vm1306_vm15 = vmor %vm1304_vm13, %vm1305_vm12 }
 0x25f   :  { %v1300_v53 = vmul.f32 %v2572_v22, %v1299_v12  ;;  %vm2646_vm1 = vmor %vm1294_vm0, %vm1295_vm14  ;;  %vm1284_vm3 = vweird.f32 %v2568_v5  ;;  %vm1254_vm12 = vweird.f32 %v2589_v63 }
 0x260   :  { %v1331_v15 = vmul.f32 0.5, %v1330_v10  ;;  %v1290_v35 = vmul.f32 %v2576_v58, %v1289_v16 }
 0x261   :  { %v1301_v6 = vmul.f32 0.5, %v1300_v53 }
 0x262   :  { %v1149_v23 = vpop.xlane.xlu0 %1148  ;;  %v1332_v48 = vsub.f32 1.5, %v1331_v15  ;;  %v1291_v9 = vmul.f32 0.5, %v1290_v35  ;;  %v1139_v15 = vpop.xlane.xlu2 %1138 }
 0x263   :  { %v1916_v46 = vpop.eup %1915  ;;  %v2584_v21 = vmax.f32 %v1149_v23, 1e-24  ;;  %v1302_v7 = vsub.f32 1.5, %v1301_v6 }
 0x264   :  { %v2586_v52 = vpop.eup %1917  ;;  %v1319_v60 = vmul.f32 %v1916_v46, %v1176_v11  ;;  %v1333_v27 = vmul.f32 %v1910_v18, %v1332_v48  ;;  %vm1325_vm6 = vweird.f32 %v1916_v46  ;;  %v1292_v25 = vsub.f32 1.5, %v1291_v9  ;;  %v1135_v9 = vpop.xlane.xlu1 %1134 }
 0x265   :  { %1919 = vrsqrt.f32 %v2584_v21  ;;  %v1279_v3 = vmul.f32 %v2586_v52, %v2568_v5  ;;  %vm1326_vm9 = vmor %vm1324_vm8, %vm1325_vm6  ;;  %v1303_v23 = vmul.f32 %v2572_v22, %v1302_v7  ;;  %v2633_v48 = vmax.f32 %v1139_v15, 1e-24 }
 0x266   :  { %v1320_v38 = vmul.f32 %v1916_v46, %v1319_v60  ;;  %1921 = vrsqrt.f32 %v2582_v24  ;;  %v1337_v51 = vsel %vm1336_vm5, %v1910_v18, %v1333_v27  ;;  %v1293_v53 = vmul.f32 %v2576_v58, %v1292_v25 }
 0x267   :  { %v1353_v59 = vmul.f32 %v1337_v51, %v2525_v54  ;;  %1923 = vrsqrt.f32 %v2589_v63  ;;  %v1280_v32 = vmul.f32 %v2586_v52, %v1279_v3  ;;  %v1307_v50 = vsel %vm1306_vm15, %v2572_v22, %v1303_v23 }
 0x268   :  { %v1321_v57 = vmul.f32 0.5, %v1320_v38  ;;  %vm1285_vm2 = vweird.f32 %v2586_v52  ;;  %v1350_v51 = vmul.f32 %v1307_v50, %v2505_v45  ;;  %v1297_v22 = vsel %vm2646_vm1, %v2576_v58, %v1293_v53 }
 0x269   :  { %1384 = vmatpush.xpose.msra.mxu1 %v1353_v59  ;;  %v1281_v13 = vmul.f32 0.5, %v1280_v32  ;;  %vm2665_vm4 = vmor %vm1284_vm3, %vm1285_vm2  ;;  %v1349_v58 = vmul.f32 %v1297_v22, %v2499_v42  ;;  %v2672_v4 = vmax.f32 %v1135_v9, 1e-24  ;;  %vm1274_vm6 = vweird.f32 %v2584_v21 }
 0x26a   :  { %v1322_v61 = vsub.f32 1.5, %v1321_v57  ;;  %v1143_v62 = vpop.xlane.xlu0 %1142  ;;  %v1133_v32 = vpop.xlane.xlu2 %1132  ;;  %vm1234_vm15 = vweird.f32 %v2610_v56  ;;  %vm1224_vm3 = vweird.f32 %v2633_v48 }
 0x26b   :  { %v2598_v28 = vpop.eup %1919  ;;  %v2602_v14 = vmax.f32 %v1143_v62, 1e-24 }
 0x26c   :  { %v1269_v54 = vmul.f32 %v2598_v28, %v2584_v21  ;;  %v1323_v8 = vmul.f32 %v1916_v46, %v1322_v61  ;;  %v2607_v18 = vpop.eup %1921  ;;  %vm1275_vm5 = vweird.f32 %v2598_v28 }
 0x26d   :  { %v2612_v12 = vpop.eup %1923  ;;  %1925 = vrsqrt.f32 %v2602_v14  ;;  %v1259_v31 = vmul.f32 %v2607_v18, %v2582_v24  ;;  %vm2689_vm7 = vmor %vm1274_vm6, %vm1275_vm5  ;;  %vm1265_vm8 = vweird.f32 %v2607_v18  ;;  %vm1244_vm1 = vweird.f32 %v2602_v14 }
 0x26e   :  { %v1327_v10 = vsel %vm1326_vm9, %v1916_v46, %v1323_v8  ;;  %v1270_v17 = vmul.f32 %v2598_v28, %v1269_v54  ;;  %v1249_v46 = vmul.f32 %v2612_v12, %v2589_v63  ;;  %1927 = vrsqrt.f32 %v2610_v56  ;;  %vm1266_vm11 = vmor %vm1264_vm10, %vm1265_vm8 }
 0x26f   :  { %v1352_v16 = vmul.f32 %v1327_v10, %v2521_v49  ;;  %v1282_v49 = vsub.f32 1.5, %v1281_v13  ;;  %v1260_v60 = vmul.f32 %v2607_v18, %v1259_v31  ;;  %1929 = vrsqrt.f32 %v2633_v48 }
 0x270   :  { %v1271_v27 = vmul.f32 0.5, %v1270_v17  ;;  %v1250_v33 = vmul.f32 %v2612_v12, %v1249_v46  ;;  %v2683_v10 = vmax.f32 %v1133_v32, 1e-24  ;;  %vm1255_vm9 = vweird.f32 %v2612_v12 }
 0x271   :  { %1385 = vmatpush.xpose.msra.mxu1 %v1352_v16  ;;  %v1283_v1 = vmul.f32 %v2586_v52, %v1282_v49  ;;  %v1261_v57 = vmul.f32 0.5, %v1260_v60  ;;  %vm2716_vm13 = vmor %vm1254_vm12, %vm1255_vm9 }
 0x272   :  { %v1137_v35 = vpop.xlane.xlu0 %1136  ;;  %v1272_v59 = vsub.f32 1.5, %v1271_v27  ;;  %v1251_v45 = vmul.f32 0.5, %v1250_v33  ;;  %vm1194_vm12 = vweird.f32 %v2683_v10 }
 0x273   :  { %v2643_v38 = vpop.eup %1925  ;;  %v2653_v39 = vmax.f32 %v1137_v35, 1e-24  ;;  %v1287_v5 = vsel %vm2665_vm4, %v2586_v52, %v1283_v1  ;;  %v1262_v54 = vsub.f32 1.5, %v1261_v57 }
 0x274   :  { %v2660_v6 = vpop.eup %1927  ;;  %v1239_v61 = vmul.f32 %v2643_v38, %v2602_v14  ;;  %v1273_v42 = vmul.f32 %v2598_v28, %v1272_v59  ;;  %v1252_v25 = vsub.f32 1.5, %v1251_v45  ;;  %v1348_v15 = vmul.f32 %v1287_v5, %v2497_v41 }
 0x275   :  { %1386 = vmatpush.xpose.msra.mxu1 %v1351_v2  ;;  %v1229_v40 = vmul.f32 %v2660_v6, %v2610_v56  ;;  %1931 = vrsqrt.f32 %v2653_v39  ;;  %v2678_v7 = vpop.eup %1929  ;;  %v1263_v17 = vmul.f32 %v2607_v18, %v1262_v54  ;;  %vm1245_vm14 = vweird.f32 %v2643_v38 }
 0x276   :  { %v1240_v8 = vmul.f32 %v2643_v38, %v1239_v61  ;;  %v1219_v13 = vmul.f32 %v2678_v7, %v2633_v48  ;;  %1933 = vrsqrt.f32 %v2672_v4  ;;  %v1277_v21 = vsel %vm2689_vm7, %v2598_v28, %v1273_v42  ;;  %vm1246_vm2 = vmor %vm1244_vm1, %vm1245_vm14 }
 0x277   :  { %v1230_v52 = vmul.f32 %v2660_v6, %v1229_v40  ;;  %1935 = vrsqrt.f32 %v2683_v10  ;;  %v1253_v41 = vmul.f32 %v2612_v12, %v1252_v25  ;;  %v1347_v28 = vmul.f32 %v1277_v21, %v2493_v36  ;;  %v1361_v21 = vpop.xlane.xlu2 %1360 }
 0x278   :  { %v1241_v16 = vmul.f32 0.5, %v1240_v8  ;;  %v1220_v23 = vmul.f32 %v2678_v7, %v1219_v13  ;;  %v1267_v24 = vsel %vm1266_vm11, %v2607_v18, %v1263_v17  ;;  %vm1235_vm0 = vweird.f32 %v2660_v6 }
 0x279   :  { %1387 = vmatpush.xpose.msra.mxu1 %v1350_v51  ;;  %v1231_v46 = vmul.f32 0.5, %v1230_v52  ;;  %v1257_v35 = vsel %vm2716_vm13, %v2612_v12, %v1253_v41  ;;  %v1346_v63 = vmul.f32 %v1267_v24, %v2489_v29  ;;  %vm1225_vm4 = vweird.f32 %v2678_v7  ;;  %vm1236_vm5 = vmor %vm1234_vm15, %vm1235_vm0 }
 0x27a   :  { %v1131_v31 = vpop.xlane.xlu0 %1130  ;;  %v1242_v2 = vsub.f32 1.5, %v1241_v16  ;;  %v1221_v36 = vmul.f32 0.5, %v1220_v23  ;;  %v1345_v22 = vmul.f32 %v1257_v35, %v2487_v20  ;;  %vm2746_vm6 = vmor %vm1224_vm3, %vm1225_vm4  ;;  %vm1214_vm8 = vweird.f32 %v2653_v39 }
 0x27b   :  { %v2700_v44 = vpop.eup %1931  ;;  %v2707_v49 = vmax.f32 %v1131_v31, 1e-24  ;;  %v1232_v50 = vsub.f32 1.5, %v1231_v46  ;;  %vm1204_vm11 = vweird.f32 %v2672_v4  ;;  %v1363_v17 = vmax.f32 %v1361_v21, 1e-24 }
 0x27c   :  { %v1209_v53 = vmul.f32 %v2700_v44, %v2653_v39  ;;  %v2714_v60 = vpop.eup %1933  ;;  %v1243_v51 = vmul.f32 %v2643_v38, %v1242_v2  ;;  %v1222_v12 = vsub.f32 1.5, %v1221_v36  ;;  %vm1215_vm7 = vweird.f32 %v2700_v44 }
 0x27d   :  { %1388 = vmatpush.xpose.msra.mxu1 %v1349_v58  ;;  %1937 = vrsqrt.f32 %v2707_v49  ;;  %v2725_v3 = vpop.eup %1935  ;;  %v1199_v18 = vmul.f32 %v2714_v60, %v2672_v4  ;;  %v1233_v9 = vmul.f32 %v2660_v6, %v1232_v50  ;;  %vm1216_vm9 = vmor %vm1214_vm8, %vm1215_vm7  ;;  %vm1205_vm10 = vweird.f32 %v2714_v60 }
 0x27e   :  { %v1210_v33 = vmul.f32 %v2700_v44, %v1209_v53  ;;  %v1189_v29 = vmul.f32 %v2725_v3, %v2683_v10  ;;  %v1247_v59 = vsel %vm1246_vm2, %v2643_v38, %v1243_v51  ;;  %v1223_v20 = vmul.f32 %v2678_v7, %v1222_v12  ;;  %vm1206_vm13 = vmor %vm1204_vm11, %vm1205_vm10 }
 0x27f   :  { %v1200_v1 = vmul.f32 %v2714_v60, %v1199_v18  ;;  %v1344_v56 = vmul.f32 %v1247_v59, %v2485_v19  ;;  %v1237_v48 = vsel %vm1236_vm5, %v2660_v6, %v1233_v9  ;;  %vm1195_vm14 = vweird.f32 %v2725_v3 }
 0x280   :  { %v1211_v57 = vmul.f32 0.5, %v1210_v33  ;;  %v1190_v14 = vmul.f32 %v2725_v3, %v1189_v29  ;;  %v1343_v40 = vmul.f32 %v1237_v48, %v2535_v0  ;;  %v1227_v19 = vsel %vm2746_vm6, %v2678_v7, %v1223_v20  ;;  %vm1196_vm15 = vmor %vm1194_vm12, %vm1195_vm14 }
 0x281   :  { %1389 = vmatpush.xpose.msra.mxu1 %v1348_v15  ;;  %v1201_v38 = vmul.f32 0.5, %v1200_v1  ;;  %v1342_v6 = vmul.f32 %v1227_v19, %v2517_v47  ;;  %vm1184_vm1 = vweird.f32 %v2707_v49  ;;  %v1412_v35 = vstv %s2789_s4  ;;  %s2028_s4 = smov 128  }
 0x282   :  { %v1212_v45 = vsub.f32 1.5, %v1211_v57  ;;  %v1191_v32 = vmul.f32 0.5, %v1190_v14  ;;  %vm1380_vm7 = vweird.f32 %v1363_v17 }
 0x283   :  { %v1938_v61 = vpop.eup %1937  ;;  %v1202_v5 = vsub.f32 1.5, %v1201_v38 }
 0x284   :  { %v1179_v58 = vmul.f32 %v1938_v61, %v2707_v49  ;;  %v1213_v8 = vmul.f32 %v2700_v44, %v1212_v45  ;;  %v1192_v42 = vsub.f32 1.5, %v1191_v32  ;;  %vm1185_vm0 = vweird.f32 %v1938_v61 }
 0x285   :  { %1390 = vmatpush.xpose.msra.mxu1 %v1347_v28  ;;  %v1203_v7 = vmul.f32 %v2714_v60, %v1202_v5  ;;  %vm1186_vm2 = vmor %vm1184_vm1, %vm1185_vm0 }
 0x286   :  { %v1180_v54 = vmul.f32 %v1938_v61, %v1179_v58  ;;  %v1217_v25 = vsel %vm1216_vm9, %v2700_v44, %v1213_v8  ;;  %v1193_v52 = vmul.f32 %v2725_v3, %v1192_v42 }
 0x287   :  { %v1341_v13 = vmul.f32 %v1217_v25, %v2509_v26  ;;  %v1207_v47 = vsel %vm1206_vm13, %v2714_v60, %v1203_v7  ;;  %v1409_v60 = vstv %s2790_s5  ;;  %s1423_s5 = sshll.u32 %s2791_s6, 4  ;;  %s1424_s5 = int_to_ptr.hbm [resolvable:$true] %s1423_s5 }
 0x288   :  { %v1181_v0 = vmul.f32 0.5, %v1180_v54  ;;  %v1340_v11 = vmul.f32 %v1207_v47, %v2501_v43  ;;  %v1197_v4 = vsel %vm1196_vm15, %v2725_v3, %v1193_v52  ;;  %v1357_v43 = vpop.xlane.xlu1 %1356 }
 0x289   :  { %1391 = vmatpush.xpose.msra.mxu1 %v1346_v63  ;;  %v1339_v26 = vmul.f32 %v1197_v4, %v2495_v37  ;;  %v1362_v31 = vmax.f32 %v1357_v43, 1e-24 }
 0x28a   :  { %v1182_v39 = vsub.f32 1.5, %v1181_v0 }
 0x28b   :  { %1939 = vrsqrt.f32 %v1362_v31  ;;  %vm1370_vm4 = vweird.f32 %v1362_v31 }
 0x28c   :  { %v1183_v15 = vmul.f32 %v1938_v61, %v1182_v39  ;;  %1941 = vrsqrt.f32 %v1363_v17 }
 0x28d   :  { %1392 = vmatpush.xpose.msra.mxu1 %v1345_v22 }
 0x28e   :  { %v1187_v10 = vsel %vm1186_vm2, %v1938_v61, %v1183_v15 }
 0x28f   :  { %v1338_v16 = vmul.f32 %v1187_v10, %v2491_v30 }
 0x291   :  { %1393 = vmatpush.xpose.msra.mxu1 %v1344_v56  ;;  %v1940_v44 = vpop.eup %1939 }
 0x292   :  { %v1365_v41 = vmul.f32 %v1940_v44, %v1362_v31  ;;  %v1942_v46 = vpop.eup %1941  ;;  %vm1371_vm3 = vweird.f32 %v1940_v44 }
 0x293   :  { %v1375_v37 = vmul.f32 %v1942_v46, %v1363_v17  ;;  %vm1372_vm5 = vmor %vm1370_vm4, %vm1371_vm3  ;;  %vm1381_vm6 = vweird.f32 %v1942_v46 }
 0x294   :  { %v1366_v23 = vmul.f32 %v1940_v44, %v1365_v41  ;;  %vm1382_vm8 = vmor %vm1380_vm7, %vm1381_vm6 }
 0x295   :  { %1394 = vmatpush.xpose.msra.mxu1 %v1343_v40  ;;  %v1376_v28 = vmul.f32 %v1942_v46, %v1375_v37 }
 0x296   :  { %v1367_v49 = vmul.f32 0.5, %v1366_v23 }
 0x297   :  { %v1377_v30 = vmul.f32 0.5, %v1376_v28 }
 0x298   :  { %v1368_v2 = vsub.f32 1.5, %v1367_v49 }
 0x299   :  { %1395 = vmatpush.xpose.msra.mxu1 %v1342_v6 }
 0x29a   :  { %v1369_v53 = vmul.f32 %v1940_v44, %v1368_v2 }
 0x29d   :  { %1396 = vmatpush.xpose.msra.mxu1 %v1341_v13 }
 0x2a1   :  { %1397 = vmatpush.xpose.msra.mxu1 %v1340_v11 }
 0x2a5   :  { %1398 = vmatpush.xpose.msra.mxu1 %v1339_v26 }
 0x2a9   :  { %1399 = vmatpush.xpose.msra.mxu1 %v1338_v16 }
 0x2ac   :  { %1400 = vmatmul.f32.vlgmr.msra.gmra.mxu1 %v2547_v55  ;;  %v1373_v55 = vsel %vm1372_vm5, %v1940_v44, %v1369_v53 }
 0x2b4   :  { %1403 = vmatmul.f32.gmra.mxu1 %v2533_v34  ;;  %v1378_v34 = vsub.f32 1.5, %v1377_v30 }
 0x2b6   :  { %v1379_v50 = vmul.f32 %v1942_v46, %v1378_v34 }
 0x2b8   :  { %v1383_v3 = vsel %vm1382_vm8, %v1942_v46, %v1379_v50 }
 0x329   :  { %v1401_v24 = vpop.f32.mrf.mxu1 }
 0x32a   :  { %v1407_v27 = vmul.f32 %v1401_v24, %v1373_v55 }
 0x32c   :  { %v1410_v36 = vadd.f32 %v1409_v60, %v1407_v27 }
 0x32e   :  { %v1413_v63 = vmul.f32 %v1412_v35, %v1410_v36 }
 0x330   :  { %1415 = vst [vmem:[#allocation9] sm:$0xff] %v1413_v63 }
 0x331   :  { %v1404_v18 = vpop.f32.mrf.mxu1 }
 0x332   :  { %v1408_v33 = vmul.f32 %v1404_v18, %v1383_v3 }
 0x334   :  { %v1411_v51 = vadd.f32 %v1409_v60, %v1408_v33 }
 0x336   :  { %v1414_v12 = vmul.f32 %v1412_v35, %v1411_v51 }
 0x338   :  { %1416 = vst [vmem:[#allocation9 + $0x8] sm:$0x7f] %v1414_v12 }
 0x339   :  { %1429 = dma.vmem_to_hbm [thread:$0]  %s1422_s29, 256, %s1424_s5, [#allocation6], %s2028_s4, %s2028_s4, %s2029_s8  }
 0x33a   :  { %2019 = dma.done.wait [#allocation6], 256  }
 0x33b   :  { %2020 = vsyncadd [#allocation6], 4294967040 }
 0x33c   :  { %1434 = vsyncpa [#allocation5], 1 }
 0x33d   :  { %1435 = vsyncpa [#allocation8], 1 }
 0x33e   :  { %1436 = vsyncpa [#allocation6], 1 }

</bundles_post_ra>
